<compile_context>
chip_gen: v7x
topology: tpu7x:2x2x1
jax: 0.10.0
libtpu: 0.0.40
codegen_flags: <defaults>
</compile_context>

<pallas_src>
import jax
import jax.numpy as jnp
from jax.experimental import pallas as pl
from jax.experimental.pallas import tpu as pltpu

_F = 4       # in_features == out_features == 4 (nn.Linear(4, 4))
_LANE = 128  # TPU vreg lane width


def _round_up(n: int, m: int) -> int:
    return (n + m - 1) // m * m


def _mycell2_kernel(w_ref, b_ref, x_ref, h_ref, out_ref):
    """new_h = tanh(x @ W.T + b + h), feature-major VPU formulation.

    w_ref:  (16,) f32 SMEM  -- torch weight, row-major: W[j, k] = w_ref[4*j + k]
    b_ref:  (4,)  f32 SMEM
    x_ref, h_ref, out_ref: (F, TB) VMEM blocks, batch on the 128-lane axis.
    """
    x = x_ref[...].astype(jnp.float32)   # (F, TB)
    h = h_ref[...].astype(jnp.float32)   # (F, TB)

    rows = []
    for j in range(_F):                  # output feature j
        acc = h[j:j + 1, :] + b_ref[j]   # (1, TB), scalar bias broadcast
        for k in range(_F):              # contraction over 4 input features
            acc = acc + w_ref[j * _F + k] * x[k:k + 1, :]   # VPU mul/add
        rows.append(jnp.tanh(acc))       # EUP
    out_ref[...] = jnp.concatenate(rows, axis=0).astype(out_ref.dtype)


def mycell2_forward(x, h, weight, bias):
    """Pallas implementation of MyCell2.forward.

    Args:
      x:      (B, 4) float32
      h:      (B, 4) float32
      weight: (4, 4) float32  (out_features, in_features), torch layout
      bias:   (4,)   float32
    Returns:
      (new_h, new_h) with new_h of shape (B, 4)
    """
    B, in_f = x.shape
    out_f = weight.shape[0]
    assert in_f == _F and out_f == _F and h.shape == (B, _F)

    # Lane-dense, feature-major layout; pad the batch to the tile size.
    tb = min(1024, _round_up(max(B, 1), _LANE))   # lanes per grid step
    b_pad = _round_up(B, tb)
    grid = (b_pad // tb,)

    x_t = jnp.pad(x.T, ((0, 0), (0, b_pad - B)))      # (F, B_pad)
    h_t = jnp.pad(h.T, ((0, 0), (0, b_pad - B)))      # (F, B_pad)
    w_flat = weight.astype(jnp.float32).reshape(-1)   # (16,)
    b_flat = bias.astype(jnp.float32)                 # (4,)

    new_h_t = pl.pallas_call(
        _mycell2_kernel,
        out_shape=jax.ShapeDtypeStruct((_F, b_pad), x.dtype),
        grid_spec=pltpu.PrefetchScalarGridSpec(
            num_scalar_prefetch=0,
            grid=grid,
            in_specs=[
                # 20 parameter scalars: resident in SMEM, read on scalar path.
                pl.BlockSpec(memory_space=pltpu.MemorySpace.SMEM),
                pl.BlockSpec(memory_space=pltpu.MemorySpace.SMEM),
                # Activations: (F, TB) tiles, batch on the 128-lane axis.
                pl.BlockSpec((_F, tb), lambda i: (0, i)),
                pl.BlockSpec((_F, tb), lambda i: (0, i)),
            ],
            out_specs=pl.BlockSpec((_F, tb), lambda i: (0, i)),
        ),
        compiler_params=pltpu.CompilerParams(
            # Batch tiles are independent -> shard grid across TCs on v7x.
            dimension_semantics=("parallel",),
        ),
    )(w_flat, b_flat, x_t, h_t)

    new_h = new_h_t[:, :B].T
    return new_h, new_h


if __name__ == "__main__":
    key = jax.random.PRNGKey(0)
    k_x, k_h, k_w, k_b = jax.random.split(key, 4)

    B, F = 2, 4  # small shapes implied by nn.Linear(4, 4)

    x = jax.random.normal(k_x, (B, F), dtype=jnp.float32)
    h = jax.random.normal(k_h, (B, F), dtype=jnp.float32)

    # Deterministic parameter init (same fan-in uniform range as torch Linear).
    bound = 1.0 / jnp.sqrt(F)
    weight = jax.random.uniform(k_w, (F, F), minval=-bound, maxval=bound,
                                dtype=jnp.float32)
    bias = jax.random.uniform(k_b, (F,), minval=-bound, maxval=bound,
                              dtype=jnp.float32)

    new_h, new_h2 = mycell2_forward(x, h, weight, bias)
    jax.block_until_ready(new_h)
    jax.block_until_ready(new_h2)

    ref = jnp.tanh(x @ weight.T + bias + h)
    assert jnp.allclose(new_h, ref, atol=1e-5), "mismatch vs reference"
    assert jnp.allclose(new_h2, ref, atol=1e-5), "mismatch vs reference"

    # Extra check: exercise the multi-tile (grid > 1) + batch-padding path.
    B2 = 2500
    x2 = jax.random.normal(k_x, (B2, F), dtype=jnp.float32)
    h2 = jax.random.normal(k_h, (B2, F), dtype=jnp.float32)
    out2, _ = mycell2_forward(x2, h2, weight, bias)
    jax.block_until_ready(out2)
    ref2 = jnp.tanh(x2 @ weight.T + bias + h2)
    assert jnp.allclose(out2, ref2, atol=1e-5), "mismatch vs reference (tiled)"

    print("KERNEL_OK")
</pallas_src>

<mosaic_0001>
module attributes {stable_mosaic.version = 11 : i64} {
  func.func @_mycell2_kernel(%arg0: i32, %arg1: memref<16xf32, #tpu.memory_space<smem>>, %arg2: memref<4xf32, #tpu.memory_space<smem>>, %arg3: memref<4x128xf32, #tpu.memory_space<vmem>>, %arg4: memref<4x128xf32, #tpu.memory_space<vmem>>, %arg5: memref<4x128xf32, #tpu.memory_space<vmem>>) attributes {dimension_semantics = [#tpu.dimension_semantics<parallel>], iteration_bounds = array<i64: 1>, scalar_prefetch = 0 : i64, scratch_operands = 0 : i64, tpu.core_type = #tpu.core_type<tc>, window_params = [{transform_indices = @transform_0, window_bounds = array<i64: 16>}, {transform_indices = @transform_1, window_bounds = array<i64: 4>}, {transform_indices = @transform_2, window_bounds = array<i64: 4, 128>}, {transform_indices = @transform_3, window_bounds = array<i64: 4, 128>}, {transform_indices = @transform_4, window_bounds = array<i64: 4, 128>}]} {
    %c0 = arith.constant 0 : index
    %c0_0 = arith.constant 0 : index
    %0 = vector.load %arg3[%c0, %c0_0] : memref<4x128xf32, #tpu.memory_space<vmem>>, vector<4x128xf32>
    %c0_1 = arith.constant 0 : index
    %c0_2 = arith.constant 0 : index
    %1 = vector.load %arg4[%c0_1, %c0_2] : memref<4x128xf32, #tpu.memory_space<vmem>>, vector<4x128xf32>
    %2 = vector.extract_strided_slice %1 {offsets = [0, 0], sizes = [1, 128], strides = [1, 1]} : vector<4x128xf32> to vector<1x128xf32>
    %c0_3 = arith.constant 0 : index
    %3 = memref.load %arg2[%c0_3] : memref<4xf32, #tpu.memory_space<smem>>
    %4 = vector.broadcast %3 : f32 to vector<1x128xf32>
    %5 = arith.addf %2, %4 : vector<1x128xf32>
    %c0_4 = arith.constant 0 : index
    %6 = memref.load %arg1[%c0_4] : memref<16xf32, #tpu.memory_space<smem>>
    %7 = vector.extract_strided_slice %0 {offsets = [0, 0], sizes = [1, 128], strides = [1, 1]} : vector<4x128xf32> to vector<1x128xf32>
    %8 = vector.broadcast %6 : f32 to vector<1x128xf32>
    %9 = arith.mulf %8, %7 : vector<1x128xf32>
    %10 = arith.addf %5, %9 : vector<1x128xf32>
    %c1 = arith.constant 1 : index
    %11 = memref.load %arg1[%c1] : memref<16xf32, #tpu.memory_space<smem>>
    %12 = vector.extract_strided_slice %0 {offsets = [1, 0], sizes = [1, 128], strides = [1, 1]} : vector<4x128xf32> to vector<1x128xf32>
    %13 = vector.broadcast %11 : f32 to vector<1x128xf32>
    %14 = arith.mulf %13, %12 : vector<1x128xf32>
    %15 = arith.addf %10, %14 : vector<1x128xf32>
    %c2 = arith.constant 2 : index
    %16 = memref.load %arg1[%c2] : memref<16xf32, #tpu.memory_space<smem>>
    %17 = vector.extract_strided_slice %0 {offsets = [2, 0], sizes = [1, 128], strides = [1, 1]} : vector<4x128xf32> to vector<1x128xf32>
    %18 = vector.broadcast %16 : f32 to vector<1x128xf32>
    %19 = arith.mulf %18, %17 : vector<1x128xf32>
    %20 = arith.addf %15, %19 : vector<1x128xf32>
    %c3 = arith.constant 3 : index
    %21 = memref.load %arg1[%c3] : memref<16xf32, #tpu.memory_space<smem>>
    %22 = vector.extract_strided_slice %0 {offsets = [3, 0], sizes = [1, 128], strides = [1, 1]} : vector<4x128xf32> to vector<1x128xf32>
    %23 = vector.broadcast %21 : f32 to vector<1x128xf32>
    %24 = arith.mulf %23, %22 : vector<1x128xf32>
    %25 = arith.addf %20, %24 : vector<1x128xf32>
    %26 = math.tanh %25 : vector<1x128xf32>
    %27 = vector.extract_strided_slice %1 {offsets = [1, 0], sizes = [1, 128], strides = [1, 1]} : vector<4x128xf32> to vector<1x128xf32>
    %c1_5 = arith.constant 1 : index
    %28 = memref.load %arg2[%c1_5] : memref<4xf32, #tpu.memory_space<smem>>
    %29 = vector.broadcast %28 : f32 to vector<1x128xf32>
    %30 = arith.addf %27, %29 : vector<1x128xf32>
    %c4 = arith.constant 4 : index
    %31 = memref.load %arg1[%c4] : memref<16xf32, #tpu.memory_space<smem>>
    %32 = vector.extract_strided_slice %0 {offsets = [0, 0], sizes = [1, 128], strides = [1, 1]} : vector<4x128xf32> to vector<1x128xf32>
    %33 = vector.broadcast %31 : f32 to vector<1x128xf32>
    %34 = arith.mulf %33, %32 : vector<1x128xf32>
    %35 = arith.addf %30, %34 : vector<1x128xf32>
    %c5 = arith.constant 5 : index
    %36 = memref.load %arg1[%c5] : memref<16xf32, #tpu.memory_space<smem>>
    %37 = vector.extract_strided_slice %0 {offsets = [1, 0], sizes = [1, 128], strides = [1, 1]} : vector<4x128xf32> to vector<1x128xf32>
    %38 = vector.broadcast %36 : f32 to vector<1x128xf32>
    %39 = arith.mulf %38, %37 : vector<1x128xf32>
    %40 = arith.addf %35, %39 : vector<1x128xf32>
    %c6 = arith.constant 6 : index
    %41 = memref.load %arg1[%c6] : memref<16xf32, #tpu.memory_space<smem>>
    %42 = vector.extract_strided_slice %0 {offsets = [2, 0], sizes = [1, 128], strides = [1, 1]} : vector<4x128xf32> to vector<1x128xf32>
    %43 = vector.broadcast %41 : f32 to vector<1x128xf32>
    %44 = arith.mulf %43, %42 : vector<1x128xf32>
    %45 = arith.addf %40, %44 : vector<1x128xf32>
    %c7 = arith.constant 7 : index
    %46 = memref.load %arg1[%c7] : memref<16xf32, #tpu.memory_space<smem>>
    %47 = vector.extract_strided_slice %0 {offsets = [3, 0], sizes = [1, 128], strides = [1, 1]} : vector<4x128xf32> to vector<1x128xf32>
    %48 = vector.broadcast %46 : f32 to vector<1x128xf32>
    %49 = arith.mulf %48, %47 : vector<1x128xf32>
    %50 = arith.addf %45, %49 : vector<1x128xf32>
    %51 = math.tanh %50 : vector<1x128xf32>
    %52 = vector.extract_strided_slice %1 {offsets = [2, 0], sizes = [1, 128], strides = [1, 1]} : vector<4x128xf32> to vector<1x128xf32>
    %c2_6 = arith.constant 2 : index
    %53 = memref.load %arg2[%c2_6] : memref<4xf32, #tpu.memory_space<smem>>
    %54 = vector.broadcast %53 : f32 to vector<1x128xf32>
    %55 = arith.addf %52, %54 : vector<1x128xf32>
    %c8 = arith.constant 8 : index
    %56 = memref.load %arg1[%c8] : memref<16xf32, #tpu.memory_space<smem>>
    %57 = vector.extract_strided_slice %0 {offsets = [0, 0], sizes = [1, 128], strides = [1, 1]} : vector<4x128xf32> to vector<1x128xf32>
    %58 = vector.broadcast %56 : f32 to vector<1x128xf32>
    %59 = arith.mulf %58, %57 : vector<1x128xf32>
    %60 = arith.addf %55, %59 : vector<1x128xf32>
    %c9 = arith.constant 9 : index
    %61 = memref.load %arg1[%c9] : memref<16xf32, #tpu.memory_space<smem>>
    %62 = vector.extract_strided_slice %0 {offsets = [1, 0], sizes = [1, 128], strides = [1, 1]} : vector<4x128xf32> to vector<1x128xf32>
    %63 = vector.broadcast %61 : f32 to vector<1x128xf32>
    %64 = arith.mulf %63, %62 : vector<1x128xf32>
    %65 = arith.addf %60, %64 : vector<1x128xf32>
    %c10 = arith.constant 10 : index
    %66 = memref.load %arg1[%c10] : memref<16xf32, #tpu.memory_space<smem>>
    %67 = vector.extract_strided_slice %0 {offsets = [2, 0], sizes = [1, 128], strides = [1, 1]} : vector<4x128xf32> to vector<1x128xf32>
    %68 = vector.broadcast %66 : f32 to vector<1x128xf32>
    %69 = arith.mulf %68, %67 : vector<1x128xf32>
    %70 = arith.addf %65, %69 : vector<1x128xf32>
    %c11 = arith.constant 11 : index
    %71 = memref.load %arg1[%c11] : memref<16xf32, #tpu.memory_space<smem>>
    %72 = vector.extract_strided_slice %0 {offsets = [3, 0], sizes = [1, 128], strides = [1, 1]} : vector<4x128xf32> to vector<1x128xf32>
    %73 = vector.broadcast %71 : f32 to vector<1x128xf32>
    %74 = arith.mulf %73, %72 : vector<1x128xf32>
    %75 = arith.addf %70, %74 : vector<1x128xf32>
    %76 = math.tanh %75 : vector<1x128xf32>
    %77 = vector.extract_strided_slice %1 {offsets = [3, 0], sizes = [1, 128], strides = [1, 1]} : vector<4x128xf32> to vector<1x128xf32>
    %c3_7 = arith.constant 3 : index
    %78 = memref.load %arg2[%c3_7] : memref<4xf32, #tpu.memory_space<smem>>
    %79 = vector.broadcast %78 : f32 to vector<1x128xf32>
    %80 = arith.addf %77, %79 : vector<1x128xf32>
    %c12 = arith.constant 12 : index
    %81 = memref.load %arg1[%c12] : memref<16xf32, #tpu.memory_space<smem>>
    %82 = vector.extract_strided_slice %0 {offsets = [0, 0], sizes = [1, 128], strides = [1, 1]} : vector<4x128xf32> to vector<1x128xf32>
    %83 = vector.broadcast %81 : f32 to vector<1x128xf32>
    %84 = arith.mulf %83, %82 : vector<1x128xf32>
    %85 = arith.addf %80, %84 : vector<1x128xf32>
    %c13 = arith.constant 13 : index
    %86 = memref.load %arg1[%c13] : memref<16xf32, #tpu.memory_space<smem>>
    %87 = vector.extract_strided_slice %0 {offsets = [1, 0], sizes = [1, 128], strides = [1, 1]} : vector<4x128xf32> to vector<1x128xf32>
    %88 = vector.broadcast %86 : f32 to vector<1x128xf32>
    %89 = arith.mulf %88, %87 : vector<1x128xf32>
    %90 = arith.addf %85, %89 : vector<1x128xf32>
    %c14 = arith.constant 14 : index
    %91 = memref.load %arg1[%c14] : memref<16xf32, #tpu.memory_space<smem>>
    %92 = vector.extract_strided_slice %0 {offsets = [2, 0], sizes = [1, 128], strides = [1, 1]} : vector<4x128xf32> to vector<1x128xf32>
    %93 = vector.broadcast %91 : f32 to vector<1x128xf32>
    %94 = arith.mulf %93, %92 : vector<1x128xf32>
    %95 = arith.addf %90, %94 : vector<1x128xf32>
    %c15 = arith.constant 15 : index
    %96 = memref.load %arg1[%c15] : memref<16xf32, #tpu.memory_space<smem>>
    %97 = vector.extract_strided_slice %0 {offsets = [3, 0], sizes = [1, 128], strides = [1, 1]} : vector<4x128xf32> to vector<1x128xf32>
    %98 = vector.broadcast %96 : f32 to vector<1x128xf32>
    %99 = arith.mulf %98, %97 : vector<1x128xf32>
    %100 = arith.addf %95, %99 : vector<1x128xf32>
    %101 = math.tanh %100 : vector<1x128xf32>
    %102 = tpu.concatenate %26, %51, %76, %101 in 0 : vector<1x128xf32>, vector<1x128xf32>, vector<1x128xf32>, vector<1x128xf32> -> vector<4x128xf32>
    %c0_8 = arith.constant 0 : index
    %c0_9 = arith.constant 0 : index
    %103 = vector.load %arg5[%c0_8, %c0_9] : memref<4x128xf32, #tpu.memory_space<vmem>>, vector<4x128xf32>
    tpu.vector_store %arg5[%c0_8, %c0_9], %102 {strides = array<i32>} : memref<4x128xf32, #tpu.memory_space<vmem>>, vector<4x128xf32>,
    return
  }
  func.func @transform_0(%arg0: i32) -> i32 {
    %c0_i32 = arith.constant 0 : i32
    %c0_i32_0 = arith.constant 0 : i32
    return %c0_i32 : i32
  }
  func.func @transform_1(%arg0: i32) -> i32 {
    %c0_i32 = arith.constant 0 : i32
    %c0_i32_0 = arith.constant 0 : i32
    return %c0_i32 : i32
  }
  func.func @transform_2(%arg0: i32) -> (i32, i32) {
    %c0_i32 = arith.constant 0 : i32
    %c0_i32_0 = arith.constant 0 : i32
    return %c0_i32, %arg0 : i32, i32
  }
  func.func @transform_3(%arg0: i32) -> (i32, i32) {
    %c0_i32 = arith.constant 0 : i32
    %c0_i32_0 = arith.constant 0 : i32
    return %c0_i32, %arg0 : i32, i32
  }
  func.func @transform_4(%arg0: i32) -> (i32, i32) {
    %c0_i32 = arith.constant 0 : i32
    %c0_i32_0 = arith.constant 0 : i32
    return %c0_i32, %arg0 : i32, i32
  }
}

</mosaic_0001>

<bundles_post_ra>
// kernel: tpu_custom_call.1
= control target key start
LH: loop header
LB: loop body
LE: loop exit
PB: predicated region body
PF: predicated region fallthrough
CT: control target
= control target key end

     0   :  { %9 = vsyncpa [#allocation4], 0  ;;  %s385_s0 = inlined_call_operand.hbm [shape: f32[16], index: 0, kind: input, shape index: {}]   ;;  %s386_s1 = inlined_call_operand.vmem [shape: f32[4], index: 1, kind: input, shape index: {}]   ;;  %s387_s2 = inlined_call_operand.vmem [shape: f32[4,128], index: 2, kind: input, shape index: {}]   ;;  %s388_s3 = inlined_call_operand.vmem [shape: f32[4,128], index: 3, kind: input, shape index: {}]   ;;  %s389_s4 = inlined_call_operand.hbm [shape: f32[4,128], index: 4, kind: output, shape index: {}]  }
   0x1   :  { %10 = vsyncpa [#allocation5], 0 }
   0x2   :  { %11 = vsyncpa [#allocation3], 0  ;;  %s26_s17 = sshll.u32 %s386_s1, 4  ;;  %s211_s20 = scalar_lea.hbm %s385_s0, 16  ;;  %s27_s17 = int_to_ptr.vmem [resolvable:$true] %s26_s17 }
   0x3   :  { %p212_p0 = scmp.ne.s32.totalorder %s385_s0, %s211_s20  ;;  %p215_p1 = scmp.lt.u32.totalorder %s211_s20, %s385_s0 }
   0x5   :  { %p217_p2 = pnand %p215_p1, %p212_p0 }
   0x7   :  { %220 = shalt.err (!%p217_p2)
}
   0x8   :  { %s261_s25 = smov [#allocation2]   ;;  %s221_s1 = scalar_lea.vmem %s27_s17, 16 }
   0x9   :  { %19 = dma.hbm_to_smem %s385_s0, 16, %s261_s25, [#allocation4]  }
   0xa   :  { %p222_p3 = scmp.ne.s32.totalorder %s27_s17, %s221_s1  ;;  %p226_p4 = scmp.lt.s32.totalorder %s27_s17, %s27_s17 }
   0xb   :  { %p227_p5 = scmp.lt.s32.totalorder %s221_s1, %s221_s1 }
   0xd   :  { %p228_p6 = por %p227_p5, %p226_p4 }
   0xf   :  { %p229_p7 = pnand %p228_p6, %p222_p3 }
  0x11   :  { %232 = shalt.err (!%p229_p7)
}
  0x12   :  { %s262_s28 = smov [#allocation6]  }
  0x13   :  { %29 = dma.vmem_to_smem %s27_s17, 16, %s262_s28, [#allocation5]  }
  0x14   :  { %255 = dma.done.wait [#allocation4], 16  }
  0x15   :  { %256 = vsyncadd [#allocation4], 4294967280 }
  0x16   :  { %257 = dma.done.wait [#allocation5], 16  }
  0x17   :  { %258 = vsyncadd [#allocation5], 4294967280 }
  0x18   :  { %40 = sfence }
  0x19   :  { %s43_s29 = sld [smem:[#allocation6]]  ;;  %s182_s5 = sld [smem:[#allocation2 + $0x1]]  ;;  %v307_v0 = vld [vmem:[%s388_s3] sm:$0xf]  ;;  %vm159_vm0 = vcmask 1040384   ;;  %vm161_vm1 = vcmask 1041408  }
  0x1a   :  { %s46_s30 = sld [smem:[#allocation2]]  ;;  %s183_s6 = sld [smem:[#allocation2 + $0x2]]  ;;  %v324_v2 = vld [vmem:[%s387_s2] sm:$0xf]  ;;  %vm163_vm2 = vcmask 1042432  }
  0x1b   :  { %s184_s0 = sld [smem:[#allocation2 + $0x3]]  ;;  %s185_s7 = sld [smem:[#allocation6 + $0x1]] }
  0x1c   :  { %s186_s8 = sld [smem:[#allocation2 + $0x4]]  ;;  %s309_s11 = sld [smem:[#allocation2 + $0x5]] }
  0x1d   :  { %s311_s12 = sld [smem:[#allocation2 + $0x6]]  ;;  %s313_s13 = sld [smem:[#allocation2 + $0x7]] }
  0x1e   :  { %s315_s14 = sld [smem:[#allocation6 + $0x2]]  ;;  %s317_s15 = sld [smem:[#allocation2 + $0x8]] }
  0x1f   :  { %v44_v1 = vstv %s43_s29  ;;  %s319_s16 = sld [smem:[#allocation2 + $0x9]]  ;;  %v51_v5 = vstv %s182_s5  ;;  %s327_s3 = sld [smem:[#allocation2 + $0xa]] }
  0x20   :  { %v45_v3 = vadd.f32 %v44_v1, %v307_v0  ;;  %v47_v4 = vstv %s46_s30  ;;  %v52_v7 = vmul.f32 %v51_v5, %v324_v2  ;;  %v58_v8 = vstv %s183_s6  ;;  %s333_s2 = sld [smem:[#allocation2 + $0xb]]  ;;  %s339_s20 = sld [smem:[#allocation2 + $0xc]] }
  0x21   :  { %v48_v6 = vmul.f32 %v47_v4, %v324_v2  ;;  %v65_v9 = vstv %s184_s0  ;;  %v59_v10 = vmul.f32 %v58_v8, %v324_v2  ;;  %v73_v12 = vstv %s185_s7  ;;  %s335_s19 = sld [smem:[#allocation6 + $0x3]]  ;;  %s343_s21 = sld [smem:[#allocation2 + $0xd]] }
  0x22   :  { %v66_v11 = vmul.f32 %v65_v9, %v324_v2  ;;  %v76_v13 = vstv %s186_s8  ;;  %v54_v15 = vrot.slane %v52_v7, 1  ;;  %v74_v16 = vadd.f32 %v73_v12, %v307_v0  ;;  %s345_s22 = sld [smem:[#allocation2 + $0xe]]  ;;  %s358_s23 = sld [smem:[#allocation2 + $0xf]] }
  0x23   :  { %v49_v14 = vadd.f32 %v48_v6, %v45_v3  ;;  %v77_v17 = vmul.f32 %v76_v13, %v324_v2  ;;  %v61_v18 = vrot.slane %v59_v10, 2  ;;  %v83_v20 = vstv %s309_s11  ;;  %s263_s24 = smov [#allocation7]  }
  0x24   :  { %v68_v19 = vrot.slane %v66_v11, 3  ;;  %v87_v21 = vstv %s311_s12  ;;  %v84_v24 = vmul.f32 %v83_v20, %v324_v2  ;;  %v94_v26 = vstv %s313_s13  ;;  %s172_s25 = sshll.u32 %s263_s24, 4  ;;  %s173_s25 = int_to_ptr.vmem [resolvable:$true] %s172_s25 }
  0x25   :  { %v56_v22 = vadd.f32 %v54_v15, %v49_v14  ;;  %v79_v23 = vrot.slane %v77_v17, 7  ;;  %v88_v25 = vmul.f32 %v87_v21, %v324_v2  ;;  %v102_v27 = vstv %s315_s14  ;;  %s233_s26 = scalar_lea.vmem %s173_s25, 64  ;;  %p238_p9 = scmp.lt.s32.totalorder %s173_s25, %s173_s25 }
  0x26   :  { %v105_v28 = vstv %s317_s15  ;;  %v112_v29 = vstv %s319_s16  ;;  %v95_v33 = vmul.f32 %v94_v26, %v324_v2  ;;  %v103_v34 = vadd.f32 %v102_v27, %v307_v0  ;;  %p234_p8 = scmp.ne.s32.totalorder %s173_s25, %s233_s26  ;;  %p239_p10 = scmp.lt.s32.totalorder %s233_s26, %s233_s26 }
  0x27   :  { %v63_v30 = vadd.f32 %v61_v18, %v56_v22  ;;  %v81_v31 = vadd.f32 %v79_v23, %v74_v16  ;;  %v90_v32 = vrot.slane %v88_v25, 1  ;;  %v106_v35 = vmul.f32 %v105_v28, %v324_v2 }
  0x28   :  { %v113_v36 = vmul.f32 %v112_v29, %v324_v2  ;;  %v119_v37 = vstv %s327_s3  ;;  %v97_v39 = vrot.slane %v95_v33, 2  ;;  %v123_v42 = vstv %s333_s2  ;;  %p240_p11 = por %p239_p10, %p238_p9 }
  0x29   :  { %v85_v38 = vadd.f32 %v84_v24, %v81_v31  ;;  %v108_v40 = vrot.slane %v106_v35, 6  ;;  %v131_v43 = vstv %s335_s19  ;;  %v70_v44 = vadd.f32 %v68_v19, %v63_v30 }
  0x2a   :  { %v115_v41 = vrot.slane %v113_v36, 7  ;;  %v120_v46 = vmul.f32 %v119_v37, %v324_v2  ;;  %v124_v47 = vmul.f32 %v123_v42, %v324_v2  ;;  %v134_v49 = vstv %s339_s20  ;;  %p241_p12 = pnand %p240_p11, %p234_p8 }
  0x2b   :  { %v92_v45 = vadd.f32 %v90_v32, %v85_v38  ;;  %v110_v48 = vadd.f32 %v108_v40, %v103_v34  ;;  %v141_v50 = vstv %s343_s21  ;;  %v148_v51 = vstv %s345_s22 }
  0x2c   :  { %v132_v53 = vadd.f32 %v131_v43, %v307_v0  ;;  %v135_v54 = vmul.f32 %v134_v49, %v324_v2  ;;  %v142_v55 = vmul.f32 %v141_v50, %v324_v2  ;;  %v126_v57 = vrot.slane %v124_v47, 1 }
  0x2d   :  { %v99_v52 = vadd.f32 %v97_v39, %v92_v45  ;;  %v117_v56 = vadd.f32 %v115_v41, %v110_v48  ;;  %v149_v58 = vmul.f32 %v148_v51, %v324_v2  ;;  %203 = vtanh.f32 %v70_v44 }
  0x2e   :  { %v137_v59 = vrot.slane %v135_v54, 5  ;;  %v144_v60 = vrot.slane %v142_v55, 6  ;;  %v155_v62 = vstv %s358_s23 }
  0x2f   :  { %v121_v61 = vadd.f32 %v120_v46, %v117_v56  ;;  %205 = vtanh.f32 %v99_v52  ;;  %v151_v1 = vrot.slane %v149_v58, 7  ;;  %v156_v0 = vmul.f32 %v155_v62, %v324_v2 }
  0x30   :  { %v139_v63 = vadd.f32 %v137_v59, %v132_v53 }
  0x31   :  { %v128_v3 = vadd.f32 %v126_v57, %v121_v61 }
  0x32   :  { %v146_v4 = vadd.f32 %v144_v60, %v139_v63 }
  0x33   :  { %207 = vtanh.f32 %v128_v3 }
  0x34   :  { %v153_v5 = vadd.f32 %v151_v1, %v146_v4 }
  0x36   :  { %v157_v6 = vadd.f32 %v156_v0, %v153_v5 }
  0x37   :  { %v204_v7 = vpop.eup %203 }
  0x38   :  { %209 = vtanh.f32 %v157_v6 }
  0x39   :  { %v206_v8 = vpop.eup %205 }
  0x3a   :  { %v160_v10 = vsel %vm159_vm0, %v204_v7, %v206_v8 }
  0x3d   :  { %v208_v9 = vpop.eup %207 }
  0x3e   :  { %v162_v11 = vsel %vm161_vm1, %v160_v10, %v208_v9 }
  0x42   :  { %v210_v12 = vpop.eup %209 }
  0x43   :  { %v164_v13 = vsel %vm163_vm2, %v162_v11, %v210_v12 }
  0x44   :  { %165 = vst [vmem:[#allocation7] sm:$0xf] %v164_v13 }
  0x45   :  { %244 = shalt.err (!%p241_p12)
}
  0x46   :  { %s245_s28 = scalar_lea.hbm %s389_s4, 64 }
  0x47   :  { %p246_p13 = scmp.ne.s32.totalorder %s389_s4, %s245_s28  ;;  %p249_p0 = scmp.lt.u32.totalorder %s245_s28, %s389_s4 }
  0x49   :  { %p251_p1 = pnand %p249_p0, %p246_p13 }
  0x4b   :  { %254 = shalt.err (!%p251_p1)
}
  0x4c   :  { %175 = dma.vmem_to_hbm [thread:$0]  %s173_s25, 64, %s389_s4, [#allocation3]  }
  0x4d   :  { %259 = dma.done.wait [#allocation3], 64  }
  0x4e   :  { %260 = vsyncadd [#allocation3], 4294967232 }
  0x4f   :  { %179 = vsyncpa [#allocation3], 1 }
  0x50   :  { %180 = vsyncpa [#allocation4], 1 }
  0x51   :  { %181 = vsyncpa [#allocation5], 1 }

</bundles_post_ra>
